<compile_context>
chip_gen: v6e
topology: v6e:2x2x1
jax: 0.10.0
libtpu: 0.0.40
codegen_flags: <defaults>
</compile_context>

<pallas_src>
import jax
import jax.numpy as jnp
from jax.experimental import pallas as pl
from jax.experimental.pallas import tpu as pltpu

EPS = 1e-5


def _round_up(v, m):
    return (v + m - 1) // m * m


def _cdiv(a, b):
    return (a + b - 1) // b


# --------------------------------------------------------------------------- #
# Pass 1: batch statistics of x (per-core partial sum(x) and x^T x).
# Grid (cores, tiles_per_core) with ("parallel","arbitrary") semantics so both
# v7x TensorCores each own half of the HBM sweep; partials summed in wrapper.
# --------------------------------------------------------------------------- #
def _stats_x_kernel(x_ref, sum_x_ref, sum_xx_ref):
    @pl.when(pl.program_id(1) == 0)
    def _():
        sum_x_ref[...] = jnp.zeros_like(sum_x_ref)
        sum_xx_ref[...] = jnp.zeros_like(sum_xx_ref)

    xt = x_ref[...]
    sum_x_ref[...] += jnp.sum(xt, axis=0, keepdims=True)[None]
    # x^T x (contract the batch axis) -> (d, d); bn1 stats derived analytically.
    sum_xx_ref[...] += jax.lax.dot_general(
        xt, xt, (((0,), (0,)), ((), ())),
        preferred_element_type=jnp.float32)[None]


# --------------------------------------------------------------------------- #
# Pass 2: fused forward up to the head pre-activations.
#   h      = ReLU(x @ w1f + b1f)                 (bn0/bn1 folded into w1f/b1f)
#   heads  = (h @ [ws|wp|wa|0])^T  written lane-dense as a (24, tile) block
# Also accumulates per-core sum / sum-of-squares of the fc_sel pre-activation
# (needed for bn_sel full-batch stats). Padded rows are corrected in wrapper.
# --------------------------------------------------------------------------- #
def _fwd_heads_kernel(x_ref, w1_ref, b1_ref, whT_ref, bh_ref,
                      heads_ref, sum_s_ref, sum_ss_ref):
    @pl.when(pl.program_id(1) == 0)
    def _():
        sum_s_ref[...] = jnp.zeros_like(sum_s_ref)
        sum_ss_ref[...] = jnp.zeros_like(sum_ss_ref)

    h = jnp.maximum(
        jnp.dot(x_ref[...], w1_ref[...], preferred_element_type=jnp.float32)
        + b1_ref[...], 0.0)                                    # (tile, hdim)

    # heads[j, n] = sum_k whT[j, k] * h[n, k]  -> lane-dense (H2, tile) output.
    heads = jax.lax.dot_general(
        whT_ref[...], h, (((1,), (1,)), ((), ())),
        preferred_element_type=jnp.float32) + bh_ref[...]
    heads_ref[...] = heads

    sdim = sum_s_ref.shape[1]
    s1 = heads[0:sdim, :]                                      # fc_sel pre-act
    sum_s_ref[...] += jnp.sum(s1, axis=1, keepdims=True)[None]
    sum_ss_ref[...] += jnp.sum(s1 * s1, axis=1, keepdims=True)[None]


# --------------------------------------------------------------------------- #
# Pass 3: finish the sel branch only (reads the lane-dense heads slab).
#   sel = sigmoid( sum_j ReLU(s1_j * scale_s_j + shift_s_j) * ws2_j + bs2 )
# The 16->1 matmul is a VPU multiply + sublane reduce (no MXU push/drain).
# --------------------------------------------------------------------------- #
def _sel_kernel(heads_ref, scs_ref, shs_ref, w2_ref, b2_ref, sel_ref):
    sdim = scs_ref.shape[0]
    s = jnp.maximum(heads_ref[0:sdim, :] * scs_ref[...] + shs_ref[...], 0.0)
    pre = jnp.sum(s * w2_ref[...], axis=0, keepdims=True) + b2_ref[...]
    sel_ref[...] = jax.nn.sigmoid(pre)


# --------------------------------------------------------------------------- #
# Wrapper
# --------------------------------------------------------------------------- #
def sel_nn_forward(x, params, tile_n=8192):
    """x: (N, D) float32.  params: tuple of arrays (see init_params)."""
    (g0, be0, w1, b1, g1, be1, wp, bp, ws, bs, gs, bes, ws2, bs2, wa, ba) = params
    n, d = x.shape
    hdim = w1.shape[1]
    sdim = ws.shape[1]
    H2 = _round_up(sdim + 2, 8)          # sel cols | pred | aux | zero padding

    # Lane-padding-aware tile cap (~4 MiB x-block; VMEM pads last dim to 128).
    row_bytes = 4 * _round_up(d, 128)
    cap = max(128, ((4 << 20) // row_bytes) // 128 * 128)
    tile = max(128, min(_round_up(tile_n, 128), cap))
    if _cdiv(n, tile) == 1:
        tile = max(128, _round_up(n, 128))
    cores = 2 if _cdiv(n, tile) >= 2 else 1   # v7x: split the reduction sweeps
    half = _cdiv(_cdiv(n, tile), cores)
    num_tiles = cores * half
    n_pad = num_tiles * tile

    xp = jnp.pad(x.astype(jnp.float32), ((0, n_pad - n), (0, 0)))  # zero rows
    inv_n = jnp.float32(1.0 / n)          # true batch size

    # ---------------- pass 1: stats of x (both cores on v7x) ----------------
    sum_x_p, sum_xx_p = pl.pallas_call(
        _stats_x_kernel,
        out_shape=(jax.ShapeDtypeStruct((cores, 1, d), jnp.float32),
                   jax.ShapeDtypeStruct((cores, d, d), jnp.float32)),
        grid=(cores, half),
        in_specs=[pl.BlockSpec((tile, d), lambda c, i: (c * half + i, 0))],
        out_specs=(pl.BlockSpec((1, 1, d), lambda c, i: (c, 0, 0)),
                   pl.BlockSpec((1, d, d), lambda c, i: (c, 0, 0))),
        compiler_params=pltpu.CompilerParams(
            dimension_semantics=("parallel", "arbitrary")),
        cost_estimate=pl.CostEstimate(
            flops=2 * n_pad * d * d, transcendentals=0,
            bytes_accessed=4 * (n_pad * d + cores * (d * d + d))),
    )(xp)
    sum_x = jnp.sum(sum_x_p, axis=0)       # (1, d)
    sum_xx = jnp.sum(sum_xx_p, axis=0)     # (d, d)

    # bn0 scale/shift from batch stats (biased variance, clamped).
    mu0 = sum_x * inv_n
    var0 = jnp.maximum(jnp.diagonal(sum_xx)[None, :] * inv_n - mu0 * mu0, 0.0)
    scale0 = g0 * jax.lax.rsqrt(var0 + EPS)
    shift0 = be0 - mu0 * scale0

    # bn1 stats analytically (h1 = bn0(x) @ w1 + b1 is affine in x).
    w1p = scale0.T * w1                    # (d, h)
    c1 = shift0 @ w1 + b1                  # (1, h)
    mu1 = mu0 @ w1p + c1
    cov0 = sum_xx * inv_n - mu0.T @ mu0
    var1 = jnp.maximum(jnp.sum(w1p * (cov0 @ w1p), axis=0, keepdims=True), 0.0)
    scale1 = g1 * jax.lax.rsqrt(var1 + EPS)
    shift1 = be1 - mu1 * scale1

    # Fold bn0 + fc1 + bn1 into one matmul:  h = ReLU(x @ w1f + b1f).
    w1f = w1p * scale1                     # (d, h)
    b1f = c1 * scale1 + shift1             # (1, h)

    # Fused heads (stored transposed / lane-dense):
    # rows 0..sdim-1 = fc_sel, row sdim = fc_pred, row sdim+1 = fc_aux, rest 0.
    w_heads = jnp.concatenate(
        [ws, wp, wa, jnp.zeros((hdim, H2 - sdim - 2), jnp.float32)], axis=1)
    b_heads = jnp.concatenate(
        [bs, bp, ba, jnp.zeros((1, H2 - sdim - 2), jnp.float32)], axis=1)
    w_heads_T = w_heads.T                  # (H2, h)
    b_heads_c = b_heads.T                  # (H2, 1)

    # ---------------- pass 2: fc1 + heads, sel-stat accumulation ------------
    heads_t, sum_s_p, sum_ss_p = pl.pallas_call(
        _fwd_heads_kernel,
        out_shape=(jax.ShapeDtypeStruct((H2, n_pad), jnp.float32),
                   jax.ShapeDtypeStruct((cores, sdim, 1), jnp.float32),
                   jax.ShapeDtypeStruct((cores, sdim, 1), jnp.float32)),
        grid=(cores, half),
        in_specs=[
            pl.BlockSpec((tile, d), lambda c, i: (c * half + i, 0)),   # x
            pl.BlockSpec((d, hdim), lambda c, i: (0, 0)),              # w1f
            pl.BlockSpec((1, hdim), lambda c, i: (0, 0)),              # b1f
            pl.BlockSpec((H2, hdim), lambda c, i: (0, 0)),             # heads W^T
            pl.BlockSpec((H2, 1), lambda c, i: (0, 0)),                # heads b
        ],
        out_specs=(
            pl.BlockSpec((H2, tile), lambda c, i: (0, c * half + i)),  # heads_t
            pl.BlockSpec((1, sdim, 1), lambda c, i: (c, 0, 0)),        # sum_s
            pl.BlockSpec((1, sdim, 1), lambda c, i: (c, 0, 0)),        # sum_ss
        ),
        compiler_params=pltpu.CompilerParams(
            dimension_semantics=("parallel", "arbitrary")),
        cost_estimate=pl.CostEstimate(
            flops=2 * n_pad * (d * hdim + hdim * H2), transcendentals=0,
            bytes_accessed=4 * (n_pad * (d + H2) + d * hdim
                                + H2 * (hdim + 1) + hdim + 2 * cores * sdim)),
    )(xp, w1f, b1f, w_heads_T, b_heads_c)

    # Padded rows have x = 0 -> constant head row; subtract analytically
    # (removes the per-row mask stream from the kernel).
    n_zero = jnp.float32(n_pad - n)
    h_pad = jnp.maximum(b1f, 0.0)                      # (1, h)
    s1_pad = (h_pad @ ws + bs).T                       # (sdim, 1)
    sum_s = jnp.sum(sum_s_p, axis=0) - n_zero * s1_pad
    sum_ss = jnp.sum(sum_ss_p, axis=0) - n_zero * s1_pad * s1_pad

    mus = sum_s * inv_n                                # (sdim, 1)
    vars_ = jnp.maximum(sum_ss * inv_n - mus * mus, 0.0)
    scale_s = gs.T * jax.lax.rsqrt(vars_ + EPS)        # (sdim, 1)
    shift_s = bes.T - mus * scale_s

    # ---------------- pass 3: finish the sel branch (parallel) --------------
    sel_t = pl.pallas_call(
        _sel_kernel,
        out_shape=jax.ShapeDtypeStruct((1, n_pad), jnp.float32),
        grid=(num_tiles,),
        in_specs=[
            pl.BlockSpec((H2, tile), lambda i: (0, i)),    # heads_t
            pl.BlockSpec((sdim, 1), lambda i: (0, 0)),     # scale_s
            pl.BlockSpec((sdim, 1), lambda i: (0, 0)),     # shift_s
            pl.BlockSpec((sdim, 1), lambda i: (0, 0)),     # ws2
            pl.BlockSpec((1, 1), lambda i: (0, 0)),        # bs2
        ],
        out_specs=pl.BlockSpec((1, tile), lambda i: (0, i)),
        compiler_params=pltpu.CompilerParams(
            dimension_semantics=("parallel",)),
        cost_estimate=pl.CostEstimate(
            flops=4 * n_pad * sdim, transcendentals=n_pad,
            bytes_accessed=4 * (n_pad * (H2 + 1) + 3 * sdim + 1)),
    )(heads_t, scale_s, shift_s, ws2, bs2)

    pred = heads_t[sdim, :n][:, None]
    aux = heads_t[sdim + 1, :n][:, None]
    sel = sel_t[0, :n][:, None]
    return pred, sel, aux


# --------------------------------------------------------------------------- #
# Parameter init (shapes mirror Sel_NN.__init__; weights stored as (in, out))
# --------------------------------------------------------------------------- #
def init_params(key, input_dim, hidden_dim=64, sel_dim=16):
    ks = jax.random.split(key, 10)

    def lin(k, fan_in, fan_out):
        bound = 1.0 / jnp.sqrt(jnp.float32(fan_in))
        kw, kb = jax.random.split(k)
        w = jax.random.uniform(kw, (fan_in, fan_out), jnp.float32, -bound, bound)
        b = jax.random.uniform(kb, (1, fan_out), jnp.float32, -bound, bound)
        return w, b

    def bn(k, f):
        kg, kb = jax.random.split(k)
        gamma = 1.0 + 0.1 * jax.random.normal(kg, (1, f), jnp.float32)
        beta = 0.1 * jax.random.normal(kb, (1, f), jnp.float32)
        return gamma, beta

    g0, be0 = bn(ks[0], input_dim)
    w1, b1 = lin(ks[1], input_dim, hidden_dim)
    g1, be1 = bn(ks[2], hidden_dim)
    wp, bp = lin(ks[3], hidden_dim, 1)
    ws, bs = lin(ks[4], hidden_dim, sel_dim)
    gs, bes = bn(ks[5], sel_dim)
    ws2, bs2 = lin(ks[6], sel_dim, 1)
    wa, ba = lin(ks[7], hidden_dim, 1)
    # NOTE: fc2 / bn2 from __init__ are unused in forward() -> not created.
    return (g0, be0, w1, b1, g1, be1, wp, bp, ws, bs, gs, bes, ws2, bs2, wa, ba)


def sel_nn_reference(x, params):
    """Pure-JAX reference (PyTorch training-mode semantics, biased variance)."""
    (g0, be0, w1, b1, g1, be1, wp, bp, ws, bs, gs, bes, ws2, bs2, wa, ba) = params

    def bn(v, gamma, beta):
        m = jnp.mean(v, axis=0, keepdims=True)
        var = jnp.mean((v - m) ** 2, axis=0, keepdims=True)
        return (v - m) / jnp.sqrt(var + EPS) * gamma + beta

    h = jnp.maximum(bn(bn(x, g0, be0) @ w1 + b1, g1, be1), 0.0)
    pred = h @ wp + bp
    s = jnp.maximum(bn(h @ ws + bs, gs, bes), 0.0)
    sel = jax.nn.sigmoid(s @ ws2 + bs2)
    aux = h @ wa + ba
    return pred, sel, aux


if __name__ == "__main__":
    key = jax.random.PRNGKey(0)
    kx, kp, kx2 = jax.random.split(key, 3)

    batch, input_dim = 8, 32
    x = jax.random.normal(kx, (batch, input_dim), jnp.float32)
    params = init_params(kp, input_dim)

    pred, sel, aux = sel_nn_forward(x, params)
    jax.block_until_ready((pred, sel, aux))
    rpred, rsel, raux = sel_nn_reference(x, params)
    assert pred.shape == (batch, 1) and sel.shape == (batch, 1) and aux.shape == (batch, 1)
    assert jnp.allclose(pred, rpred, atol=2e-4, rtol=2e-4)
    assert jnp.allclose(sel, rsel, atol=2e-4, rtol=2e-4)
    assert jnp.allclose(aux, raux, atol=2e-4, rtol=2e-4)

    # Multi-tile path: exercises the 2-core split, padding correction, pipeline.
    batch2 = 300
    x2 = jax.random.normal(kx2, (batch2, input_dim), jnp.float32)
    p2, s2, a2 = sel_nn_forward(x2, params, tile_n=128)
    jax.block_until_ready((p2, s2, a2))
    rp2, rs2, ra2 = sel_nn_reference(x2, params)
    assert p2.shape == (batch2, 1) and s2.shape == (batch2, 1) and a2.shape == (batch2, 1)
    assert jnp.allclose(p2, rp2, atol=2e-4, rtol=2e-4)
    assert jnp.allclose(s2, rs2, atol=2e-4, rtol=2e-4)
    assert jnp.allclose(a2, ra2, atol=2e-4, rtol=2e-4)

    print("KERNEL_OK")
</pallas_src>

<mosaic_0001>
module attributes {stable_mosaic.version = 11 : i64} {
  func.func @_stats_x_kernel(%arg0: i32, %arg1: i32, %arg2: memref<128x32xf32, #tpu.memory_space<vmem>>, %arg3: memref<1x1x32xf32, #tpu.memory_space<vmem>>, %arg4: memref<1x32x32xf32, #tpu.memory_space<vmem>>) attributes {dimension_semantics = [#tpu.dimension_semantics<parallel>, #tpu.dimension_semantics<arbitrary>], iteration_bounds = array<i64: 1, 1>, scalar_prefetch = 0 : i64, scratch_operands = 0 : i64, tpu.core_type = #tpu.core_type<tc>, window_params = [{transform_indices = @transform_0, window_bounds = array<i64: 128, 32>}, {transform_indices = @transform_1, window_bounds = array<i64: 1, 1, 32>}, {transform_indices = @transform_2, window_bounds = array<i64: 1, 32, 32>}]} {
    %c0_i32 = arith.constant 0 : i32
    %0 = arith.cmpi eq, %arg1, %c0_i32 : i32
    %1 = arith.extui %0 : i1 to i32
    %c0_i32_0 = arith.constant 0 : i32
    %2 = arith.cmpi ne, %1, %c0_i32_0 : i32
    scf.if %2 {
      %cst_15 = arith.constant 0.000000e+00 : f32
      %15 = vector.broadcast %cst_15 : f32 to vector<1x1x32xf32>
      %c0_16 = arith.constant 0 : index
      %c0_17 = arith.constant 0 : index
      %c0_18 = arith.constant 0 : index
      %16 = vector.load %arg3[%c0_16, %c0_17, %c0_18] : memref<1x1x32xf32, #tpu.memory_space<vmem>>, vector<1x1x32xf32>
      tpu.vector_store %arg3[%c0_16, %c0_17, %c0_18], %15 {strides = array<i32>} : memref<1x1x32xf32, #tpu.memory_space<vmem>>, vector<1x1x32xf32>,
      %cst_19 = arith.constant 0.000000e+00 : f32
      %17 = vector.broadcast %cst_19 : f32 to vector<1x32x32xf32>
      %c0_20 = arith.constant 0 : index
      %c0_21 = arith.constant 0 : index
      %c0_22 = arith.constant 0 : index
      %18 = vector.load %arg4[%c0_20, %c0_21, %c0_22] : memref<1x32x32xf32, #tpu.memory_space<vmem>>, vector<1x32x32xf32>
      tpu.vector_store %arg4[%c0_20, %c0_21, %c0_22], %17 {strides = array<i32>} : memref<1x32x32xf32, #tpu.memory_space<vmem>>, vector<1x32x32xf32>,
    } else {
    }
    %c0 = arith.constant 0 : index
    %c0_1 = arith.constant 0 : index
    %3 = vector.load %arg2[%c0, %c0_1] : memref<128x32xf32, #tpu.memory_space<vmem>>, vector<128x32xf32>
    %c0_2 = arith.constant 0 : index
    %c0_3 = arith.constant 0 : index
    %c0_4 = arith.constant 0 : index
    %4 = vector.load %arg3[%c0_2, %c0_3, %c0_4] : memref<1x1x32xf32, #tpu.memory_space<vmem>>, vector<1x1x32xf32>
    %cst = arith.constant dense<0.000000e+00> : vector<32xf32>
    %5 = vector.multi_reduction <add>, %3, %cst [0] : vector<128x32xf32> to vector<32xf32>
    %6 = vector.shape_cast %5 : vector<32xf32> to vector<1x32xf32>
    %7 = vector.shape_cast %6 : vector<1x32xf32> to vector<1x1x32xf32>
    %8 = arith.addf %4, %7 : vector<1x1x32xf32>
    %c0_5 = arith.constant 0 : index
    %c0_6 = arith.constant 0 : index
    %c0_7 = arith.constant 0 : index
    %9 = vector.load %arg3[%c0_5, %c0_6, %c0_7] : memref<1x1x32xf32, #tpu.memory_space<vmem>>, vector<1x1x32xf32>
    tpu.vector_store %arg3[%c0_5, %c0_6, %c0_7], %8 {strides = array<i32>} : memref<1x1x32xf32, #tpu.memory_space<vmem>>, vector<1x1x32xf32>,
    %c0_8 = arith.constant 0 : index
    %c0_9 = arith.constant 0 : index
    %c0_10 = arith.constant 0 : index
    %10 = vector.load %arg4[%c0_8, %c0_9, %c0_10] : memref<1x32x32xf32, #tpu.memory_space<vmem>>, vector<1x32x32xf32>
    %cst_11 = arith.constant dense<0.000000e+00> : vector<32x32xf32>
    %11 = tpu.matmul %3, %3, %cst_11 {dimension_numbers = #tpu.dot_dimension_numbers<[0], [0], [1], [1], [0, 1, 1, 1], [], []>} : vector<128x32xf32>, vector<128x32xf32>, vector<32x32xf32> -> vector<32x32xf32>
    %12 = vector.shape_cast %11 : vector<32x32xf32> to vector<1x32x32xf32>
    %13 = arith.addf %10, %12 : vector<1x32x32xf32>
    %c0_12 = arith.constant 0 : index
    %c0_13 = arith.constant 0 : index
    %c0_14 = arith.constant 0 : index
    %14 = vector.load %arg4[%c0_12, %c0_13, %c0_14] : memref<1x32x32xf32, #tpu.memory_space<vmem>>, vector<1x32x32xf32>
    tpu.vector_store %arg4[%c0_12, %c0_13, %c0_14], %13 {strides = array<i32>} : memref<1x32x32xf32, #tpu.memory_space<vmem>>, vector<1x32x32xf32>,
    return
  }
  func.func @transform_0(%arg0: i32, %arg1: i32) -> (i32, i32) {
    %c1_i32 = arith.constant 1 : i32
    %0 = arith.muli %arg0, %c1_i32 : i32
    %1 = arith.addi %0, %arg1 : i32
    %c0_i32 = arith.constant 0 : i32
    %c0_i32_0 = arith.constant 0 : i32
    return %1, %c0_i32 : i32, i32
  }
  func.func @transform_1(%arg0: i32, %arg1: i32) -> (i32, i32, i32) {
    %c0_i32 = arith.constant 0 : i32
    %c0_i32_0 = arith.constant 0 : i32
    %c0_i32_1 = arith.constant 0 : i32
    return %arg0, %c0_i32, %c0_i32_0 : i32, i32, i32
  }
  func.func @transform_2(%arg0: i32, %arg1: i32) -> (i32, i32, i32) {
    %c0_i32 = arith.constant 0 : i32
    %c0_i32_0 = arith.constant 0 : i32
    %c0_i32_1 = arith.constant 0 : i32
    return %arg0, %c0_i32, %c0_i32_0 : i32, i32, i32
  }
}

</mosaic_0001>

<bundles_post_ra>
// kernel: tpu_custom_call.1
= control target key start
LH: loop header
LB: loop body
LE: loop exit
PB: predicated region body
PF: predicated region fallthrough
CT: control target
= control target key end

     0   :  { %8 = vsyncpa [#allocation3], 0  ;;  %vm40_vm0 = vcmask 261120   ;;  %s606_s0 = inlined_call_operand.vmem [shape: f32[128,32], index: 0, kind: input, shape index: {}]   ;;  %s607_s1 = inlined_call_operand.hbm [shape: f32[1,1,32], index: 1, kind: output, shape index: {0}]   ;;  %s608_s2 = inlined_call_operand.hbm [shape: f32[1,32,32], index: 2, kind: output, shape index: {1}]  }
   0x1   :  { %v430_v0 = vld [vmem:[%s606_s0] sm:$0xff]  ;;  %v435_v1 = vld [vmem:[%s606_s0 + $0x8] sm:$0xff]  ;;  %v440_v2 = vld [vmem:[%s606_s0 + $0x10] sm:$0xff] }
   0x2   :  { %v63_v3 = vsel %vm40_vm0, %v430_v0, 0.0  ;;  %107 = vxpose.xlu0.b32.start [1/16] (narrow) %v430_v0, 32  ;;  %v64_v4 = vsel %vm40_vm0, %v435_v1, 0.0  ;;  %v66_v5 = vsel %vm40_vm0, %v440_v2, 0.0  ;;  %v452_v7 = vld [vmem:[%s606_s0 + $0x18] sm:$0xff]  ;;  %v459_v10 = vld [vmem:[%s606_s0 + $0x20] sm:$0xff] }
   0x3   :  { %v65_v6 = vadd.f32 %v64_v4, %v63_v3  ;;  %v68_v8 = vsel %vm40_vm0, %v452_v7, 0.0  ;;  %v70_v11 = vsel %vm40_vm0, %v459_v10, 0.0  ;;  %v467_v12 = vld [vmem:[%s606_s0 + $0x78] sm:$0xff]  ;;  %v472_v14 = vld [vmem:[%s606_s0 + $0x28] sm:$0xff] }
   0x4   :  { %288 = vmatprep.subr.mxu0 %v467_v12  ;;  %326 = vmatprep.subr.mxu1 %v467_v12 }
   0x5   :  { %v67_v9 = vadd.f32 %v66_v5, %v65_v6 }
   0x6   :  { %108 = vxpose.xlu0.b32.cont [2/16] (narrow) %v435_v1, 32 }
   0x7   :  { %v69_v13 = vadd.f32 %v68_v8, %v67_v9 }
   0x8   :  { %9 = vsyncpa [#allocation5], 0  ;;  %v72_v15 = vsel %vm40_vm0, %v472_v14, 0.0  ;;  %v481_v16 = vld [vmem:[%s606_s0 + $0x70] sm:$0xff]  ;;  %289 = vmatpush3.msra.mxu0 %v467_v12  ;;  %342 = vmatpush3.msra.mxu1 %v467_v12  ;;  %v498_v20 = vld [vmem:[%s606_s0 + $0x68] sm:$0xff]  ;;  %v407_v25 = vmov 0.0  }
   0x9   :  { %v71_v17 = vadd.f32 %v70_v11, %v69_v13  ;;  %v488_v18 = vld [vmem:[%s606_s0 + $0x30] sm:$0xff]  ;;  %290 = vmatprep.subr.mxu0 %v481_v16  ;;  %327 = vmatprep.subr.mxu1 %v481_v16  ;;  %v52_v22 = vld [vmem:[%s606_s0 + $0x38] sm:$0xff]  ;;  %v510_v24 = vld [vmem:[%s606_s0 + $0x60] sm:$0xff]  ;;  %42 = vst.msk [vmem:[#allocation4 + $0x8] sm:$0xff] %vm40_vm0, %v407_v25  ;;  %v88_v46 = vsel %vm40_vm0, %v498_v20, 0.0  ;;  %v90_v48 = vsel %vm40_vm0, %v481_v16, 0.0 }
   0xa   :  { %109 = vxpose.xlu0.b32.cont [3/16] (narrow) %v440_v2, 32  ;;  %v74_v19 = vsel %vm40_vm0, %v488_v18, 0.0  ;;  %291 = vmatpush3.msra.mxu0 %v481_v16  ;;  %v76_v23 = vsel %vm40_vm0, %v52_v22, 0.0  ;;  %41 = vst.msk [vmem:[#allocation4] sm:$0xff] %vm40_vm0, %v407_v25  ;;  %43 = vst.msk [vmem:[#allocation4 + $0x10] sm:$0xff] %vm40_vm0, %v407_v25  ;;  %v53_v27 = vld [vmem:[%s606_s0 + $0x40] sm:$0xff] }
   0xb   :  { %v73_v21 = vadd.f32 %v72_v15, %v71_v17  ;;  %292 = vmatprep.subr.mxu0 %v498_v20  ;;  %343 = vmatpush3.msra.mxu1 %v481_v16  ;;  %44 = vst.msk [vmem:[#allocation4 + $0x18] sm:$0xff] %vm40_vm0, %v407_v25  ;;  %v78_v28 = vsel %vm40_vm0, %v53_v27, 0.0  ;;  %v532_v29 = vld [vmem:[%s606_s0 + $0x58] sm:$0xff]  ;;  %v54_v31 = vld [vmem:[%s606_s0 + $0x48] sm:$0xff]  ;;  %v55_v33 = vld [vmem:[%s606_s0 + $0x50] sm:$0xff]  ;;  %v86_v39 = vsel %vm40_vm0, %v510_v24, 0.0 }
   0xc   :  { %293 = vmatpush3.msra.mxu0 %v498_v20  ;;  %328 = vmatprep.subr.mxu1 %v498_v20  ;;  %v80_v32 = vsel %vm40_vm0, %v54_v31, 0.0  ;;  %v82_v35 = vsel %vm40_vm0, %v55_v33, 0.0  ;;  %v84_v37 = vsel %vm40_vm0, %v532_v29, 0.0  ;;  %v92_v50 = vsel %vm40_vm0, %v467_v12, 0.0  ;;  %s408_s0 = smov [#allocation2]  }
   0xd   :  { %v75_v26 = vadd.f32 %v74_v19, %v73_v21  ;;  %294 = vmatprep.subr.mxu0 %v510_v24  ;;  %344 = vmatpush3.msra.mxu1 %v498_v20  ;;  %vm38_vm1 = vcmask 253952   ;;  %s238_s13 = sshll.u32 %s408_s0, 4  ;;  %s239_s13 = int_to_ptr.vmem [resolvable:$true] %s238_s13 }
   0xe   :  { %110 = vxpose.xlu0.b32.cont [4/16] (narrow) %v452_v7, 32  ;;  %295 = vmatpush3.msra.mxu0 %v510_v24  ;;  %39 = vst.msk [vmem:[#allocation2] sm:$0x1] %vm38_vm1, %v407_v25  ;;  %s363_s14 = scalar_lea.vmem %s239_s13, 16  ;;  %s367_s15 = scalar_lea.vmem %s239_s13, 32 }
   0xf   :  { %v77_v30 = vadd.f32 %v76_v23, %v75_v26  ;;  %296 = vmatprep.subr.mxu0 %v532_v29  ;;  %329 = vmatprep.subr.mxu1 %v510_v24  ;;  %p364_p0 = scmp.ne.s32.totalorder %s239_s13, %s363_s14  ;;  %p368_p1 = scmp.lt.s32.totalorder %s239_s13, %s239_s13 }
  0x10   :  { %297 = vmatpush3.msra.mxu0 %v532_v29  ;;  %345 = vmatpush3.msra.mxu1 %v510_v24  ;;  %p369_p2 = scmp.lt.s32.totalorder %s367_s15, %s363_s14 }
  0x11   :  { %v79_v34 = vadd.f32 %v78_v28, %v77_v30  ;;  %298 = vmatprep.subr.mxu0 %v55_v33  ;;  %330 = vmatprep.subr.mxu1 %v532_v29 }
  0x12   :  { %111 = vxpose.xlu0.b32.cont [5/16] (narrow) %v459_v10, 32  ;;  %299 = vmatpush3.msra.mxu0 %v55_v33  ;;  %p370_p3 = por %p369_p2, %p368_p1 }
  0x13   :  { %v81_v36 = vadd.f32 %v80_v32, %v79_v34  ;;  %300 = vmatprep.subr.mxu0 %v54_v31  ;;  %346 = vmatpush3.msra.mxu1 %v532_v29 }
  0x14   :  { %301 = vmatpush3.msra.mxu0 %v54_v31  ;;  %331 = vmatprep.subr.mxu1 %v55_v33  ;;  %p371_p4 = pnand %p370_p3, %p364_p0 }
  0x15   :  { %v83_v38 = vadd.f32 %v82_v35, %v81_v36  ;;  %302 = vmatprep.subr.mxu0 %v53_v27  ;;  %347 = vmatpush3.msra.mxu1 %v55_v33  ;;  %v61_v58 = vld [vmem:[#allocation2] sm:$0x1] }
  0x16   :  { %112 = vxpose.xlu0.b32.cont [6/16] (narrow) %v472_v14, 32  ;;  %303 = vmatpush3.msra.mxu0 %v53_v27 }
  0x17   :  { %v85_v40 = vadd.f32 %v84_v37, %v83_v38  ;;  %304 = vmatprep.subr.mxu0 %v52_v22  ;;  %332 = vmatprep.subr.mxu1 %v54_v31 }
  0x18   :  { %305 = vmatpush3.msra.mxu0 %v52_v22  ;;  %348 = vmatpush3.msra.mxu1 %v54_v31 }
  0x19   :  { %v87_v41 = vadd.f32 %v86_v39, %v85_v40  ;;  %306 = vmatprep.subr.mxu0 %v488_v18  ;;  %333 = vmatprep.subr.mxu1 %v53_v27 }
  0x1a   :  { %113 = vxpose.xlu0.b32.cont [7/16] (narrow) %v488_v18, 32  ;;  %307 = vmatpush3.msra.mxu0 %v488_v18 }
  0x1b   :  { %308 = vmatprep.subr.mxu0 %v472_v14  ;;  %349 = vmatpush3.msra.mxu1 %v53_v27  ;;  %v89_v47 = vadd.f32 %v88_v46, %v87_v41 }
  0x1c   :  { %309 = vmatpush3.msra.mxu0 %v472_v14  ;;  %334 = vmatprep.subr.mxu1 %v52_v22 }
  0x1d   :  { %310 = vmatprep.subr.mxu0 %v459_v10  ;;  %350 = vmatpush3.msra.mxu1 %v52_v22  ;;  %v91_v49 = vadd.f32 %v90_v48, %v89_v47 }
  0x1e   :  { %114 = vxpose.xlu0.b32.cont [8/16] (narrow) %v52_v22, 32  ;;  %311 = vmatpush3.msra.mxu0 %v459_v10 }
  0x1f   :  { %312 = vmatprep.subr.mxu0 %v452_v7  ;;  %335 = vmatprep.subr.mxu1 %v488_v18  ;;  %v93_v51 = vadd.f32 %v92_v50, %v91_v49 }
  0x20   :  { %313 = vmatpush3.msra.mxu0 %v452_v7  ;;  %351 = vmatpush3.msra.mxu1 %v488_v18 }
  0x21   :  { %314 = vmatprep.subr.mxu0 %v440_v2  ;;  %336 = vmatprep.subr.mxu1 %v472_v14  ;;  %v94_v52 = vrot.slane %v93_v51, 4 }
  0x22   :  { %115 = vxpose.xlu0.b32.cont [9/16] (narrow) %v53_v27, 32  ;;  %315 = vmatpush3.msra.mxu0 %v440_v2 }
  0x23   :  { %316 = vmatprep.subr.mxu0 %v435_v1  ;;  %352 = vmatpush3.msra.mxu1 %v472_v14  ;;  %v95_v53 = vadd.f32 %v94_v52, %v93_v51 }
  0x24   :  { %317 = vmatpush3.msra.mxu0 %v435_v1  ;;  %337 = vmatprep.subr.mxu1 %v459_v10 }
  0x25   :  { %318 = vmatprep.subr.mxu0 %v430_v0  ;;  %353 = vmatpush3.msra.mxu1 %v459_v10  ;;  %v96_v54 = vrot.slane %v95_v53, 2 }
  0x26   :  { %116 = vxpose.xlu0.b32.cont [10/16] (narrow) %v54_v31, 32  ;;  %319 = vmatpush3.msra.mxu0 %v430_v0 }
  0x27   :  { %338 = vmatprep.subr.mxu1 %v452_v7  ;;  %v97_v55 = vadd.f32 %v96_v54, %v95_v53 }
  0x28   :  { %354 = vmatpush3.msra.mxu1 %v452_v7 }
  0x29   :  { %339 = vmatprep.subr.mxu1 %v440_v2  ;;  %v98_v56 = vrot.slane %v97_v55, 1 }
  0x2a   :  { %117 = vxpose.xlu0.b32.cont [11/16] (narrow) %v55_v33, 32  ;;  %355 = vmatpush3.msra.mxu1 %v440_v2 }
  0x2b   :  { %340 = vmatprep.subr.mxu1 %v435_v1  ;;  %v99_v57 = vadd.f32 %v98_v56, %v97_v55 }
  0x2c   :  { %356 = vmatpush3.msra.mxu1 %v435_v1 }
  0x2d   :  { %341 = vmatprep.subr.mxu1 %v430_v0  ;;  %v100_v59 = vadd.f32 %v99_v57, %v61_v58 }
  0x2e   :  { %118 = vxpose.xlu0.b32.cont [12/16] (narrow) %v532_v29, 32  ;;  %357 = vmatpush3.msra.mxu1 %v430_v0 }
  0x2f   :  { %102 = vst.msk [vmem:[#allocation2] sm:$0x1] %vm38_vm1, %v100_v59 }
  0x32   :  { %119 = vxpose.xlu0.b32.cont [13/16] (narrow) %v510_v24, 32 }
  0x36   :  { %120 = vxpose.xlu0.b32.cont [14/16] (narrow) %v498_v20, 32 }
  0x3a   :  { %121 = vxpose.xlu0.b32.cont [15/16] (narrow) %v481_v16, 32 }
  0x3e   :  { %122 = vxpose.xlu0.b32.end [16/16] (narrow) %v467_v12, 32 }
  0x7e   :  { %v123_v42 = vpop.trf.xlu0 }
  0x7f   :  { %320 = vmatprep.mubr.f32.mxu0 %v123_v42 }
  0x82   :  { %v124_v43 = vpop.trf.xlu0 }
  0x83   :  { %321 = vmatmul.mubr.f32.vlgmr.msra.gmra.mxu0 %v124_v43 }
  0x86   :  { %v125_v44 = vpop.trf.xlu0 }
  0x87   :  { %323 = vmatprep.mubr.f32.mxu1 %v125_v44 }
  0x8a   :  { %v126_v45 = vpop.trf.xlu0 }
  0x8b   :  { %324 = vmatmul.mubr.f32.vlgmr.msra.gmra.mxu1 %v126_v45 }
  0x8c   :  { %374 = shalt.err (!%p371_p4)
}
  0x8d   :  { %241 = dma.vmem_to_hbm [thread:$0]  %s239_s13, 16, %s607_s1, [#allocation3]   ;;  %v104_v60 = vld [vmem:[#allocation4 + $0x8] sm:$0xff]  ;;  %v103_v62 = vld [vmem:[#allocation4] sm:$0xff]  ;;  %v106_v2 = vld [vmem:[#allocation4 + $0x18] sm:$0xff] }
  0x8e   :  { %s409_s18 = smov [#allocation4]   ;;  %v105_v4 = vld [vmem:[#allocation4 + $0x10] sm:$0xff] }
  0x8f   :  { %s247_s19 = sshll.u32 %s409_s18, 4  ;;  %s248_s19 = int_to_ptr.vmem [resolvable:$true] %s247_s19 }
  0x90   :  { %s383_s1 = scalar_lea.vmem %s248_s19, 512  ;;  %p388_p6 = scmp.lt.s32.totalorder %s248_s19, %s248_s19 }
  0x91   :  { %p384_p5 = scmp.ne.s32.totalorder %s248_s19, %s383_s1  ;;  %p389_p7 = scmp.lt.s32.totalorder %s383_s1, %s383_s1 }
  0x93   :  { %p390_p8 = por %p389_p7, %p388_p6 }
  0x95   :  { %p391_p9 = pnand %p390_p8, %p384_p5 }
 0x143   :  { %v322_v61 = vpop.f32.mrf.mxu0 }
 0x144   :  { %v225_v63 = vadd.f32 %v322_v61, %v104_v60 }
 0x145   :  { %v205_v0 = vpop.f32.mrf.mxu0 }
 0x146   :  { %229 = vst.msk [vmem:[#allocation4 + $0x8] sm:$0xff] %vm40_vm0, %v225_v63  ;;  %v224_v1 = vadd.f32 %v205_v0, %v103_v62 }
 0x148   :  { %228 = vst.msk [vmem:[#allocation4] sm:$0xff] %vm40_vm0, %v224_v1 }
 0x14b   :  { %v325_v3 = vpop.f32.mrf.mxu1 }
 0x14c   :  { %v227_v5 = vadd.f32 %v325_v3, %v106_v2 }
 0x14d   :  { %v215_v6 = vpop.f32.mrf.mxu1 }
 0x14e   :  { %231 = vst.msk [vmem:[#allocation4 + $0x18] sm:$0xff] %vm40_vm0, %v227_v5  ;;  %v226_v7 = vadd.f32 %v215_v6, %v105_v4 }
 0x150   :  { %230 = vst.msk [vmem:[#allocation4 + $0x10] sm:$0xff] %vm40_vm0, %v226_v7 }
 0x151   :  { %394 = shalt.err (!%p391_p9)
}
 0x152   :  { %s410_s20 = smov 128   ;;  %s411_s21 = smov 8  }
 0x153   :  { %253 = dma.vmem_to_hbm [thread:$0]  %s248_s19, 512, %s608_s2, [#allocation5], %s410_s20, %s410_s20, %s411_s21  }
 0x154   :  { %403 = dma.done.wait [#allocation3], 16  }
 0x155   :  { %404 = vsyncadd [#allocation3], 4294967280 }
 0x156   :  { %405 = dma.done.wait [#allocation5], 512  }
 0x157   :  { %406 = vsyncadd [#allocation5], 4294966784 }
 0x158   :  { %260 = vsyncpa [#allocation3], 1 }
 0x159   :  { %261 = vsyncpa [#allocation5], 1 }

</bundles_post_ra>
